<compile_context>
chip_gen: v6e
topology: v6e:2x2x1
jax: 0.10.0
libtpu: 0.0.40
codegen_flags: <defaults>
</compile_context>

<pallas_src>
import functools
import math

import jax
import jax.numpy as jnp
from jax import lax
from jax.experimental import pallas as pl
from jax.experimental.pallas import tpu as pltpu


def _inverse_embedding_kernel(x_ref, w_ref, mult_ref, soft_ref, *, ntoken, beta):
    """One grid step handles one batch element.

    x_ref    : (1, ninp, seq)   f32 input block
    w_ref    : (ninp, vocab)    f32 full (transposed) embedding table, resident
    mult_ref : (1, seq, ntoken) f32 cosine-similarity output block
    soft_ref : (1, seq, 1)      f32 soft-argmax output block
    """
    x = x_ref[0]        # (ninp, seq)
    w = w_ref[...]      # (ninp, vocab)

    # L2-normalize input columns and weight columns over the feature (ninp) axis.
    x_norm = x / jnp.sqrt(jnp.sum(x * x, axis=0, keepdims=True))       # (ninp, seq)
    w_norm = w / jnp.sqrt(jnp.sum(w * w, axis=0, keepdims=True))       # (ninp, vocab)
    w_norm = w_norm[:, :ntoken]                                        # (ninp, ntoken)

    # Cosine similarity on the MXU: contract ninp -> (seq, ntoken).
    mult = lax.dot_general(
        x_norm, w_norm,
        dimension_numbers=(((0,), (0,)), ((), ())),
        preferred_element_type=jnp.float32,
    )
    mult_ref[0] = mult.astype(mult_ref.dtype)

    # Soft-argmax over the token axis: expected index under softmax(beta * mult).
    z = mult * beta
    z = z - jnp.max(z, axis=-1, keepdims=True)
    e = jnp.exp(z)
    den = jnp.sum(e, axis=-1, keepdims=True)                           # (seq, 1)
    idx = lax.broadcasted_iota(jnp.int32, mult.shape, 1).astype(jnp.float32)
    num = jnp.sum(e * idx, axis=-1, keepdims=True)                     # (seq, 1)
    soft_ref[0] = (num / den).astype(soft_ref.dtype)


def inverse_embedding_forward(x, weight, ntoken, beta=1.0):
    """x: (bs, ninp, seq) f32; weight: (ninp, ntoken+1) f32. Returns (mult, output)."""
    bs, ninp, seq = x.shape
    d, vocab = weight.shape
    assert d == ninp and ntoken <= vocab

    kernel = functools.partial(_inverse_embedding_kernel, ntoken=ntoken, beta=beta)

    mult, soft = pl.pallas_call(
        kernel,
        out_shape=(
            jax.ShapeDtypeStruct((bs, seq, ntoken), jnp.float32),
            jax.ShapeDtypeStruct((bs, seq, 1), jnp.float32),
        ),
        grid=(bs,),
        in_specs=[
            pl.BlockSpec((1, ninp, seq), lambda b: (b, 0, 0)),   # per-batch input slab
            pl.BlockSpec((ninp, vocab), lambda b: (0, 0)),       # grid-invariant weights
        ],
        out_specs=(
            pl.BlockSpec((1, seq, ntoken), lambda b: (b, 0, 0)),
            pl.BlockSpec((1, seq, 1), lambda b: (b, 0, 0)),
        ),
        compiler_params=pltpu.CompilerParams(dimension_semantics=("parallel",)),
    )(x, weight)

    # Glue permute (output.permute(0, 2, 1)) done in the XLA wrapper.
    output = jnp.transpose(soft, (0, 2, 1))   # (bs, 1, seq)
    return mult, output


if __name__ == "__main__":
    # Small shapes consistent with the module.
    bs, seq, ntoken, ninp = 2, 8, 16, 32
    vocab = ntoken + 1
    beta = 1.0

    key = jax.random.PRNGKey(0)
    k_w, k_x = jax.random.split(key)

    weight = jax.random.normal(k_w, (ninp, vocab), dtype=jnp.float32)   # transposed table
    x = jax.random.normal(k_x, (bs, ninp, seq), dtype=jnp.float32)      # (bs, ninp, seq)

    mult, output = inverse_embedding_forward(x, weight, ntoken, beta=beta)
    mult = jax.block_until_ready(mult)
    output = jax.block_until_ready(output)

    # ---- Pure-JAX reference mirroring the PyTorch forward ----
    inp = jnp.transpose(x, (0, 2, 1))                         # (bs, seq, ninp)
    input_abs = jnp.linalg.norm(inp, axis=2)                  # (bs, seq)
    weight_abs = jnp.linalg.norm(weight, axis=0)              # (vocab,)
    inp_p = jnp.transpose(inp, (2, 0, 1))                     # (ninp, bs, seq)
    input_norm = inp_p / input_abs                            # broadcast over features
    weight_norm = weight / weight_abs
    input_norm = jnp.transpose(input_norm, (1, 2, 0))         # (bs, seq, ninp)
    mult_ref = jnp.einsum(
        "bsd,dt->bst", input_norm, weight_norm[:, :ntoken],
        precision=lax.Precision.HIGHEST,
    )                                                          # (bs, seq, ntoken)
    sm = jax.nn.softmax(beta * mult_ref, axis=-1)
    idx = jnp.arange(ntoken, dtype=jnp.float32)
    out_ref = jnp.sum(sm * idx, axis=-1, keepdims=True)        # (bs, seq, 1)
    out_ref = jnp.transpose(out_ref, (0, 2, 1))                # (bs, 1, seq)

    assert mult.shape == (bs, seq, ntoken)
    assert output.shape == (bs, 1, seq)
    assert jnp.allclose(mult, mult_ref, atol=1e-4, rtol=1e-5)
    assert jnp.allclose(output, out_ref, atol=1e-3, rtol=1e-4)

    print("KERNEL_OK")
</pallas_src>

<mosaic_0001>
module attributes {stable_mosaic.version = 11 : i64} {
  func.func @_inverse_embedding_kernel(%arg0: i32, %arg1: memref<1x32x8xf32, #tpu.memory_space<vmem>>, %arg2: memref<32x17xf32, #tpu.memory_space<vmem>>, %arg3: memref<1x8x16xf32, #tpu.memory_space<vmem>>, %arg4: memref<1x8x1xf32, #tpu.memory_space<vmem>>) attributes {dimension_semantics = [#tpu.dimension_semantics<parallel>], iteration_bounds = array<i64: 2>, scalar_prefetch = 0 : i64, scratch_operands = 0 : i64, tpu.core_type = #tpu.core_type<tc>, window_params = [{transform_indices = @transform_0, window_bounds = array<i64: 1, 32, 8>}, {pipeline_mode = #tpu.pipeline_mode<synchronous>, transform_indices = @transform_1, window_bounds = array<i64: 32, 17>}, {transform_indices = @transform_2, window_bounds = array<i64: 1, 8, 16>}, {transform_indices = @transform_3, window_bounds = array<i64: 1, 8, 1>}]} {
    %c0 = arith.constant 0 : index
    %c0_0 = arith.constant 0 : index
    %c0_1 = arith.constant 0 : index
    %0 = vector.load %arg1[%c0, %c0_0, %c0_1] : memref<1x32x8xf32, #tpu.memory_space<vmem>>, vector<1x32x8xf32>
    %1 = vector.shape_cast %0 : vector<1x32x8xf32> to vector<32x8xf32>
    %c0_2 = arith.constant 0 : index
    %c0_3 = arith.constant 0 : index
    %2 = vector.load %arg2[%c0_2, %c0_3] : memref<32x17xf32, #tpu.memory_space<vmem>>, vector<32x17xf32>
    %3 = arith.mulf %1, %1 : vector<32x8xf32>
    %cst = arith.constant dense<0.000000e+00> : vector<8xf32>
    %4 = vector.multi_reduction <add>, %3, %cst [0] : vector<32x8xf32> to vector<8xf32>
    %5 = vector.shape_cast %4 : vector<8xf32> to vector<1x8xf32>
    %6 = math.sqrt %5 : vector<1x8xf32>
    %7 = vector.broadcast %6 : vector<1x8xf32> to vector<32x8xf32>
    %8 = arith.divf %1, %7 : vector<32x8xf32>
    %9 = arith.mulf %2, %2 : vector<32x17xf32>
    %cst_4 = arith.constant dense<0.000000e+00> : vector<17xf32>
    %10 = vector.multi_reduction <add>, %9, %cst_4 [0] : vector<32x17xf32> to vector<17xf32>
    %11 = vector.shape_cast %10 : vector<17xf32> to vector<1x17xf32>
    %12 = math.sqrt %11 : vector<1x17xf32>
    %13 = vector.broadcast %12 : vector<1x17xf32> to vector<32x17xf32>
    %14 = arith.divf %2, %13 : vector<32x17xf32>
    %15 = vector.extract_strided_slice %14 {offsets = [0, 0], sizes = [32, 16], strides = [1, 1]} : vector<32x17xf32> to vector<32x16xf32>
    %cst_5 = arith.constant dense<0.000000e+00> : vector<8x16xf32>
    %16 = tpu.matmul %8, %15, %cst_5 {dimension_numbers = #tpu.dot_dimension_numbers<[0], [0], [1], [1], [0, 1, 1, 1], [], []>} : vector<32x8xf32>, vector<32x16xf32>, vector<8x16xf32> -> vector<8x16xf32>
    %c0_6 = arith.constant 0 : index
    %c0_7 = arith.constant 0 : index
    %c0_8 = arith.constant 0 : index
    %17 = vector.load %arg3[%c0_6, %c0_7, %c0_8] : memref<1x8x16xf32, #tpu.memory_space<vmem>>, vector<1x8x16xf32>
    %18 = vector.shape_cast %17 : vector<1x8x16xf32> to vector<8x16xf32>
    %19 = vector.shape_cast %16 : vector<8x16xf32> to vector<1x8x16xf32>
    tpu.vector_store %arg3[%c0_6, %c0_7, %c0_8], %19 {strides = array<i32>} : memref<1x8x16xf32, #tpu.memory_space<vmem>>, vector<1x8x16xf32>,
    %cst_9 = arith.constant 1.000000e+00 : f32
    %20 = vector.broadcast %cst_9 : f32 to vector<8x16xf32>
    %21 = arith.mulf %16, %20 : vector<8x16xf32>
    %cst_10 = arith.constant dense<0xFF800000> : vector<8xf32>
    %22 = vector.multi_reduction <maximumf>, %21, %cst_10 [1] : vector<8x16xf32> to vector<8xf32>
    %23 = vector.shape_cast %22 : vector<8xf32> to vector<8x1xf32>
    %24 = vector.broadcast %23 : vector<8x1xf32> to vector<8x16xf32>
    %25 = arith.subf %21, %24 : vector<8x16xf32>
    %26 = math.exp %25 : vector<8x16xf32>
    %cst_11 = arith.constant dense<0.000000e+00> : vector<8xf32>
    %27 = vector.multi_reduction <add>, %26, %cst_11 [1] : vector<8x16xf32> to vector<8xf32>
    %28 = vector.shape_cast %27 : vector<8xf32> to vector<8x1xf32>
    %29 = tpu.iota {dimensions = array<i32: 1>} : vector<8x16xi32>
    %30 = arith.sitofp %29 : vector<8x16xi32> to vector<8x16xf32>
    %31 = arith.mulf %26, %30 : vector<8x16xf32>
    %cst_12 = arith.constant dense<0.000000e+00> : vector<8xf32>
    %32 = vector.multi_reduction <add>, %31, %cst_12 [1] : vector<8x16xf32> to vector<8xf32>
    %33 = vector.shape_cast %32 : vector<8xf32> to vector<8x1xf32>
    %34 = arith.divf %33, %28 : vector<8x1xf32>
    %c0_13 = arith.constant 0 : index
    %c0_14 = arith.constant 0 : index
    %c0_15 = arith.constant 0 : index
    %35 = vector.load %arg4[%c0_13, %c0_14, %c0_15] : memref<1x8x1xf32, #tpu.memory_space<vmem>>, vector<1x8x1xf32>
    %36 = vector.shape_cast %35 : vector<1x8x1xf32> to vector<8x1xf32>
    %37 = vector.shape_cast %34 : vector<8x1xf32> to vector<1x8x1xf32>
    tpu.vector_store %arg4[%c0_13, %c0_14, %c0_15], %37 {strides = array<i32>} : memref<1x8x1xf32, #tpu.memory_space<vmem>>, vector<1x8x1xf32>,
    return
  }
  func.func @transform_0(%arg0: i32) -> (i32, i32, i32) {
    %c0_i32 = arith.constant 0 : i32
    %c0_i32_0 = arith.constant 0 : i32
    %c0_i32_1 = arith.constant 0 : i32
    return %arg0, %c0_i32, %c0_i32_0 : i32, i32, i32
  }
  func.func @transform_1(%arg0: i32) -> (i32, i32) {
    %c0_i32 = arith.constant 0 : i32
    %c0_i32_0 = arith.constant 0 : i32
    %c0_i32_1 = arith.constant 0 : i32
    return %c0_i32, %c0_i32_0 : i32, i32
  }
  func.func @transform_2(%arg0: i32) -> (i32, i32, i32) {
    %c0_i32 = arith.constant 0 : i32
    %c0_i32_0 = arith.constant 0 : i32
    %c0_i32_1 = arith.constant 0 : i32
    return %arg0, %c0_i32, %c0_i32_0 : i32, i32, i32
  }
  func.func @transform_3(%arg0: i32) -> (i32, i32, i32) {
    %c0_i32 = arith.constant 0 : i32
    %c0_i32_0 = arith.constant 0 : i32
    %c0_i32_1 = arith.constant 0 : i32
    return %arg0, %c0_i32, %c0_i32_0 : i32, i32, i32
  }
}

</mosaic_0001>

<bundles_post_ra>
// kernel: tpu_custom_call.1
= control target key start
LH: loop header
LB: loop body
LE: loop exit
PB: predicated region body
PF: predicated region fallthrough
CT: control target
= control target key end

     0   :  { %9 = vsyncpa [#allocation3], 0  ;;  %s788_s0 = inlined_call_operand.vmem [shape: f32[2,32,8], index: 0, kind: input, shape index: {}]   ;;  %s789_s1 = inlined_call_operand.vmem [shape: f32[32,17], index: 1, kind: input, shape index: {}]   ;;  %s790_s2 = inlined_call_operand.hbm [shape: f32[2,8,16], index: 2, kind: output, shape index: {0}]   ;;  %s791_s3 = inlined_call_operand.vmem [shape: f32[2,8,1], index: 3, kind: output, shape index: {1}]  }
   0x1   :  { %11 = vsyncpa [#allocation3 + $0x1], 0  ;;  %s648_s12 = smov 0   ;;  %s650_s13 = smov 0  }
   0x2   :  { %s652_s14 = smov 0   ;;  %s654_s15 = smov 0  }
   0x3 LB: > { %s669_s16 = sadd.s32 4294967295, %s623_s15   ;;  %s480_s17 = sadd.s32 4294967294, %s623_s15   ;;  %s623_s15 = sphi %s654_s15, %s797_s15   ;;  %s619_s14 = sphi %s652_s14, %s796_s14   ;;  %s615_s13 = sphi %s650_s13, %s795_s13   ;;  %s611_s12 = sphi %s648_s12, %s794_s12  }
   0x4   : > { %s673_s18 = sadd.s32 1, %s623_s15   ;;  %s71_s19 = sadd.s32 1, %s619_s14 }
   0x5   : > { %s68_s20 = ssub.s32 %s623_s15, %s673_s18  ;;  %p81_p0 = scmp.ne.s32.totalorder %s619_s14, %s615_s13 }
   0x6   : > { %p69_p1 = scmp.eq.s32.totalorder %s68_s20, 0  ;;  %p82_p2 = scmp.eq.s32.totalorder %s669_s16, 1 }
   0x7   : > { %p87_p3 = scmp.ne.s32.totalorder %s615_s13, %s611_s12  ;;  %p88_p4 = scmp.eq.s32.totalorder %s480_s17, 1 }
   0x8   : > { %s684_s21 = scalar_select %p69_p1, %s619_s14, %s71_s19  }
   0x9   : > { %p686_p5 = por %p82_p2, %p81_p0  ;;  %p690_p6 = por %p88_p4, %p87_p3 }
   0xa   : > { %p483_p7 = scmp.ge.s32.totalorder %s623_s15, 1  ;;  %p143_p8 = scmp.lt.s32.totalorder %s623_s15, 3 }
   0xc   : > { %p144_p9 = pnand %p483_p7, %p143_p8 }
   0xd   : > { %p171_p10 = scmp.lt.s32.totalorder (!%p144_p9), %s669_s16, 1  ;;  %s162_s10 = sand.u32 (!%p144_p9), 1, %s615_s13  }
   0xe   : > { %147 = sbr.rel (%p144_p9) target bundleno = 710 (0x2c6), region = 28  ;;  %s484_s11 = sshll.u32 (!%p144_p9), %s162_s10, 3 }
   0xf   : > { %s164_s17 = scalar_lea.vmem (!%p144_p9), [#allocation2], %s484_s11  ;;  %s490_s19 = sshll.u32 (!%p144_p9), %s669_s16, 7 }
  0x10   : > { %s394_s20 = sshll.u32 (!%p144_p9), %s164_s17, 4  ;;  %s392_s26 = scalar_lea.hbm (!%p144_p9), %s790_s2, %s490_s19  ;;  %s395_s20 = int_to_ptr.vmem [resolvable:$true] %s394_s20 }
  0x11   : > { %s377_s27 = scalar_lea.sflag (!%p144_p9), [#allocation3], %s162_s10  ;;  %s563_s28 = scalar_lea.vmem (!%p144_p9), %s395_s20, 128 }
  0x12   : > { %p564_p11 = scmp.ne.s32.totalorder (!%p144_p9), %s395_s20, %s563_s28  ;;  %s627_s29 = smov (!%p144_p9), [#allocation2]  }
  0x13   : > { %v700_v0 = vld [vmem:[%s789_s1] sm:$0xff]  ;;  %v705_v1 = vld [vmem:[%s789_s1 + $0x8] sm:$0xff]  ;;  %v710_v2 = vld [vmem:[%s789_s1 + $0x10] sm:$0xff]  ;;  %v625_v3 = vmov 0.0   ;;  %vm222_vm0 = vcmask 138240   ;;  %s725_s5 = scalar_select %p171_p10, %s669_s16, 1 }
  0x14   : > { %499 = vmatprep.subr.mxu0 %v625_v3  ;;  %v716_v4 = vld [vmem:[%s789_s1 + $0x18] sm:$0xff]  ;;  %v218_v5 = vmul.f32 %v700_v0, %v700_v0  ;;  %v219_v6 = vmul.f32 %v705_v1, %v705_v1  ;;  %v220_v7 = vmul.f32 %v710_v2, %v710_v2  ;;  %vm626_vm1 = vmmov 0   ;;  %p565_p12 = pnand %p564_p11, %p686_p5  ;;  %s567_s30 = sshll.u32 %s627_s29, 4  ;;  %s568_s30 = int_to_ptr.vmem [resolvable:$false] %s567_s30 }
  0x15   : > { %v221_v8 = vmul.f32 %v716_v4, %v716_v4  ;;  %507 = vmatprep.mubr.msk.f32.mxu0 %vm626_vm1, %v625_v3  ;;  %s493_s6 = sshll.u32 %s725_s5, 5  ;;  %vm192_vm2 = vcmask 64512   ;;  %vm280_vm7 = vcmask 261120   ;;  %vm354_vm8 = vcmask 130048   ;;  %s569_s4 = scalar_lea.vmem %s568_s30, 256 }
  0x16   : > { %v223_v9 = vsel %vm222_vm0, %v218_v5, 0.0  ;;  %v224_v10 = vsel %vm222_vm0, %v219_v6, 0.0  ;;  %v226_v11 = vsel %vm222_vm0, %v220_v7, 0.0  ;;  %s175_s9 = scalar_lea.vmem %s788_s0, %s493_s6  ;;  %v365_v6 = vlaneseq  ;;  %p566_p13 = pneg %p565_p12 }
  0x17   : > { %v225_v12 = vadd.f32 %v224_v10, %v223_v9  ;;  %v228_v13 = vsel %vm222_vm0, %v221_v8, 0.0  ;;  %v180_v14 = vld [vmem:[%s175_s9] sm:$0xff]  ;;  %v181_v15 = vld [vmem:[%s175_s9 + $0x8] sm:$0xff]  ;;  %v734_v16 = vld [vmem:[%s175_s9 + $0x10] sm:$0xff]  ;;  %p570_p0 = scmp.lt.s32.totalorder %s395_s20, %s568_s30  ;;  %p571_p1 = scmp.lt.s32.totalorder %s569_s4, %s563_s28 }
  0x18   : > { %v183_v18 = vld [vmem:[%s175_s9 + $0x18] sm:$0xff]  ;;  %v188_v19 = vmul.f32 %v180_v14, %v180_v14  ;;  %v189_v20 = vmul.f32 %v181_v15, %v181_v15  ;;  %v190_v21 = vmul.f32 %v734_v16, %v734_v16  ;;  %v366_v7 = vand.u32 127, %v365_v6 }
  0x19   : > { %v227_v17 = vadd.f32 %v226_v11, %v225_v12  ;;  %v191_v22 = vmul.f32 %v183_v18, %v183_v18  ;;  %p572_p2 = por %p571_p1, %p570_p0 }
  0x1a   : > { %v193_v24 = vsel %vm192_vm2, %v188_v19, 0.0  ;;  %v194_v25 = vsel %vm192_vm2, %v189_v20, 0.0  ;;  %v196_v26 = vsel %vm192_vm2, %v190_v21, 0.0  ;;  %v367_v8 = vcvt.s32.f32 %v366_v7 }
  0x1b   : > { %v229_v23 = vadd.f32 %v228_v13, %v227_v17  ;;  %v195_v27 = vadd.f32 %v194_v25, %v193_v24  ;;  %v198_v29 = vsel %vm192_vm2, %v191_v22, 0.0  ;;  %p573_p3 = pnand %p572_p2, %p566_p13 }
  0x1d   : > { %v230_v28 = vrot.slane %v229_v23, 4  ;;  %v197_v30 = vadd.f32 %v196_v26, %v195_v27 }
  0x1f   : > { %v231_v31 = vadd.f32 %v230_v28, %v229_v23  ;;  %v199_v32 = vadd.f32 %v198_v29, %v197_v30 }
  0x21   : > { %v232_v33 = vrot.slane %v231_v31, 2  ;;  %v200_v34 = vrot.slane %v199_v32, 4 }
  0x23   : > { %v233_v35 = vadd.f32 %v232_v33, %v231_v31  ;;  %v201_v36 = vadd.f32 %v200_v34, %v199_v32 }
  0x25   : > { %v234_v37 = vrot.slane %v233_v35, 1  ;;  %v202_v38 = vrot.slane %v201_v36, 2 }
  0x27   : > { %v235_v39 = vadd.f32 %v234_v37, %v233_v35  ;;  %v203_v40 = vadd.f32 %v202_v38, %v201_v36 }
  0x29   : > { %551 = vrsqrt.f32 %v235_v39  ;;  %v204_v41 = vrot.slane %v203_v40, 1  ;;  %vm238_vm3 = vcmp.eq.f32.partialorder %v235_v39, inf  ;;  %v241_v44 = vand.u32 2147483648, %v235_v39 }
  0x2a   : > { %vm240_vm4 = vcmp.eq.f32.partialorder %v235_v39, 0.0 }
  0x2b   : > { %v205_v42 = vadd.f32 %v204_v41, %v203_v40 }
  0x2d   : > { %553 = vrsqrt.f32 %v205_v42  ;;  %vm208_vm5 = vcmp.eq.f32.partialorder %v205_v42, inf  ;;  %v211_v49 = vand.u32 2147483648, %v205_v42  ;;  %vm210_vm6 = vcmp.eq.f32.partialorder %v205_v42, 0.0 }
  0x36   : > { %v552_v43 = vpop.eup %551 }
  0x37   : > { %v237_v45 = vmul.f32 %v552_v43, %v235_v39 }
  0x39   : > { %v239_v46 = vsel %vm238_vm3, %v235_v39, %v237_v45 }
  0x3a   : > { %v242_v47 = vsel %vm240_vm4, %v241_v44, %v239_v46  ;;  %v554_v48 = vpop.eup %553 }
  0x3b   : > { %555 = vrcp.f32 %v242_v47  ;;  %v207_v50 = vmul.f32 %v554_v48, %v205_v42 }
  0x3d   : > { %v209_v51 = vsel %vm208_vm5, %v205_v42, %v207_v50 }
  0x3e   : > { %v212_v52 = vsel %vm210_vm6, %v211_v49, %v209_v51 }
  0x3f   : > { %557 = vrcp.f32 %v212_v52 }
  0x48   : > { %v556_v53 = vpop.eup %555 }
  0x49   : > { %v247_v54 = vmul.f32 %v556_v53, %v716_v4  ;;  %v246_v55 = vmul.f32 %v556_v53, %v710_v2  ;;  %v245_v56 = vmul.f32 %v556_v53, %v705_v1  ;;  %v244_v57 = vmul.f32 %v556_v53, %v700_v0 }
  0x4b   : > { %500 = vmatpush3.msra.mxu0 %v247_v54 }
  0x4c   : > { %501 = vmatprep.subr.mxu0 %v625_v3  ;;  %v558_v58 = vpop.eup %557 }
  0x4d   : > { %502 = vmatpush3.msra.mxu0 %v246_v55  ;;  %v214_v59 = vmul.f32 %v558_v58, %v180_v14  ;;  %v215_v60 = vmul.f32 %v558_v58, %v181_v15  ;;  %v216_v61 = vmul.f32 %v558_v58, %v734_v16  ;;  %v217_v62 = vmul.f32 %v558_v58, %v183_v18 }
  0x4e   : > { %503 = vmatprep.subr.mxu0 %v625_v3 }
  0x4f   : > { %504 = vmatpush3.msra.mxu0 %v245_v56  ;;  %248 = vxpose.xlu0.b32.start [1/4] (short) (narrow) %v214_v59, 8 }
  0x50   : > { %505 = vmatprep.subr.mxu0 %v625_v3 }
  0x51   : > { %506 = vmatpush3.msra.mxu0 %v244_v57 }
  0x53   : > { %249 = vxpose.xlu0.b32.cont [2/4] (short) (narrow) %v215_v60, 8 }
  0x57   : > { %250 = vxpose.xlu0.b32.cont [3/4] (short) (narrow) %v216_v61, 8 }
  0x5b   : > { %251 = vxpose.xlu0.b32.end [4/4] (short) (narrow) %v217_v62, 8 }
  0xcb   : > { %v264_v63 = vpop.trf.xlu0 }
  0xcc   : > { %508 = vmatmul.mubr.msk.f32.vlgmr.msra.gmra.mxu0 %vm280_vm7, %v264_v63 }
 0x18c   : > { %v350_v0 = vpop.f32.mrf.mxu0 }
 0x18d   : > { %v356_v1 = vsel %vm354_vm8, %v350_v0, -inf  ;;  %355 = vst.msk [vmem:[%s164_s17] sm:$0xff] %vm354_vm8, %v350_v0 }
 0x18e   : > { %357 = vmax.xlane.f32.xlu1 %v356_v1  ;;  %v509_v2 = vpop.f32.mrf.mxu0 }
 0x217   : > { %v358_v3 = vpop.xlane.xlu1 %357 }
 0x218   : > { %v359_v4 = vsub.f32 %v350_v0, %v358_v3 }
 0x21a   : > { %v360_v5 = vmul.f32 1.442695, %v359_v4 }
 0x21c   : > { %559 = vpow2.f32 %v360_v5 }
 0x229   : > { %v560_v9 = vpop.eup %559 }
 0x22a   : > { %v362_v10 = vsel %vm354_vm8, %v560_v9, 0.0  ;;  %v368_v11 = vmul.f32 %v560_v9, %v367_v8 }
 0x22b   : > { %363 = vadd.xlane.f32.xlu1 %v362_v10 }
 0x22c   : > { %v369_v12 = vsel %vm354_vm8, %v368_v11, 0.0 }
 0x22f   : > { %370 = vadd.xlane.f32.xlu1 %v369_v12 }
 0x230   : > { %576 = shalt.err (!%p573_p3)
}
 0x231   : > { %s577_s16 = scalar_lea.hbm %s392_s26, 128  ;;  %s581_s8 = scalar_lea.hbm %s790_s2, 256 }
 0x232   : > { %p578_p4 = scmp.ne.s32.totalorder %s392_s26, %s577_s16  ;;  %p582_p9 = scmp.lt.s32.totalorder %s392_s26, %s790_s2 }
 0x233   : > { %p583_p10 = scmp.lt.s32.totalorder %s581_s8, %s577_s16 }
 0x234   : > { %p579_p7 = pnand %p578_p4, %p686_p5 }
 0x235   : > { %p584_p11 = por %p583_p10, %p582_p9 }
 0x236   : > { %p580_p8 = pneg %p579_p7 }
 0x238   : > { %p585_p12 = pnand %p584_p11, %p580_p8 }
 0x23a   : > { %588 = shalt.err (!%p585_p12)
}
 0x23b   : > { %510 = dma.vmem_to_hbm [thread:$0]  (%p686_p5), %s395_s20, 128, %s392_s26, %s377_s27   ;;  %vm374_vm9 = vcmask 7168  }
 0x23c   : > { %s487_s11 = sshll.u32 %s725_s5, 3 }
 0x23d   : > { %s179_s24 = scalar_lea.vmem %s791_s3, %s487_s11 }
 0x2b4   : > { %v364_v13 = vpop.xlane.xlu1 %363 }
 0x2b5   : > { %561 = vrcp.f32 %v364_v13 }
 0x2b8   : > { %v371_v15 = vpop.xlane.xlu1 %370 }
 0x2c2   : > { %v562_v14 = vpop.eup %561 }
 0x2c3   : > { %v373_v16 = vmul.f32 %v562_v14, %v371_v15 }
 0x2c5   : > { %375 = vst.msk [vmem:[%s179_s24] sm:$0xff] %vm374_vm9, %v373_v16 }
 0x2c6 PF: > { %p516_p13 = scmp.ge.s32.totalorder %s623_s15, 2  ;;  %s409_s22 = sand.u32 1, %s611_s12  }
 0x2c7   : > { %s410_s20 = scalar_lea.sflag [#allocation3], %s409_s22 }
 0x2c8   : > { %p513_p5 = pnand %p516_p13, %p690_p6 }
 0x2ca   : > { %p514_p0 = pneg %p513_p5 }
 0x2cc   : > { %606 = dma.done.wait (%p514_p0), %s410_s20, 128  }
 0x2cd   : > { %608 = vsyncadd (%p514_p0), %s410_s20, 4294967168  ;;  %p14_p1 = scmp.ge.s32.totalorder %s673_s18, 4   ;;  %s794_s12 = smov %s615_s13 }
 0x2ce   : > { %s795_s13 = smov %s619_s14  ;;  %s796_s14 = smov %s684_s21 }
 0x2cf   : > { %s797_s15 = smov %s673_s18  ;;  %16 = sbr.rel (!%p14_p1) target bundleno = 3 (0x3), region = 75 }
 0x2d4   :  { %422 = vsyncpa [#allocation3], 1 }
 0x2d5   :  { %424 = vsyncpa [#allocation3 + $0x1], 1 }

</bundles_post_ra>
